<compile_context>
chip_gen: v7x
topology: tpu7x:2x2x1
jax: 0.10.0
libtpu: 0.0.40
codegen_flags: <defaults>
</compile_context>

<pallas_src>
import jax
import jax.numpy as jnp
from jax.experimental import pallas as pl
from jax.experimental.pallas import tpu as pltpu

HIDDEN = 256
LANE = 128

_TILE_VMEM_BUDGET = 28 * 1024 * 1024   # target working set for kernel tiles
_VMEM_LIMIT_CAP = 48 * 1024 * 1024     # never request more scoped VMEM (v7x: 64 MiB phys)
_TM_CANDIDATES = (512, 256, 128, 64, 32, 16, 8)
_TK_CANDIDATES = (8192, 4096, 2048, 1024, 512, 256, 128)


def _round_up(x, m):
    return ((x + m - 1) // m) * m


# --------------------------------------------------------------------------- #
# Kernels
# --------------------------------------------------------------------------- #
def _disc_kernel_fullk(x_ref, w1_ref, b1_ref, w2_ref, b2_ref, o_ref):
    """Full-K-resident path: one batch tile per grid step, whole w1 in VMEM.

    x_ref  : (TM, K)   input tile in its native dtype (cast to bf16 in-kernel)
    w1_ref : (K, 256)  bf16 layer-1 weights (resident; fetched from HBM once)
    b1_ref : (1, 256)  f32 layer-1 bias
    w2_ref : (1, 256)  f32 layer-2 weights as a row
    b2_ref : (1,)      f32 layer-2 bias (SMEM scalar)
    o_ref  : (TM, 128) f32 lane-dense output (value broadcast across lanes)
    """
    x = x_ref[...].astype(jnp.bfloat16)                       # VPU cast, hides under DMA
    h = jnp.dot(x, w1_ref[...], preferred_element_type=jnp.float32) + b1_ref[...]
    h = jnp.where(h > 0, h, 0.2 * h)                          # LeakyReLU(0.2)
    # Layer 2 (out_features=1): VPU multiply + lane reduction, not an N=1 matmul.
    z = jnp.sum(h * w2_ref[...], axis=-1, keepdims=True) + b2_ref[0]
    s = pl.reciprocal(1.0 + jnp.exp(-z), approx=True)         # sigmoid on the EUP
    o_ref[...] = jnp.broadcast_to(s, o_ref.shape)             # unmasked vst store


def _disc_kernel_tiled(x_ref, w1_ref, b1_ref, w2_ref, b2_ref, o_ref, acc_ref):
    """K-tiled fallback for very large in_dim: K axis last, f32 VMEM accumulator."""
    k = pl.program_id(1)

    @pl.when(k == 0)
    def _():
        acc_ref[...] = jnp.zeros_like(acc_ref)

    x = x_ref[...].astype(jnp.bfloat16)
    acc_ref[...] += jnp.dot(x, w1_ref[...], preferred_element_type=jnp.float32)

    @pl.when(k == pl.num_programs(1) - 1)
    def _():
        h = acc_ref[...] + b1_ref[...]
        h = jnp.where(h > 0, h, 0.2 * h)
        z = jnp.sum(h * w2_ref[...], axis=-1, keepdims=True) + b2_ref[0]
        s = pl.reciprocal(1.0 + jnp.exp(-z), approx=True)
        o_ref[...] = jnp.broadcast_to(s, o_ref.shape)


# --------------------------------------------------------------------------- #
# VMEM footprint accounting (double-buffered pipeline buffers counted twice)
# --------------------------------------------------------------------------- #
def _fullk_vmem_bytes(tm, padded_k, x_itemsize):
    return (2 * tm * padded_k * x_itemsize      # x tile, double-buffered
            + 2 * padded_k * HIDDEN * 2         # w1 (bf16), double-buffered
            + 2 * tm * LANE * 4                 # output tile, double-buffered
            + 8 * HIDDEN * 4 + 4096)            # biases / slack


def _tiled_vmem_bytes(tm, tk, x_itemsize):
    return (2 * tm * tk * x_itemsize
            + 2 * tk * HIDDEN * 2
            + tm * HIDDEN * 4                   # f32 accumulator scratch
            + 2 * tm * LANE * 4
            + 8 * HIDDEN * 4 + 4096)


# --------------------------------------------------------------------------- #
# One-time parameter layout (amortized across forward calls)
# --------------------------------------------------------------------------- #
def prepare_params(w1, b1, w2, b2):
    in_dim, hidden = w1.shape
    assert hidden == HIDDEN
    padded_k = _round_up(in_dim, LANE)
    w1_bf16 = w1.astype(jnp.bfloat16)
    if padded_k != in_dim:                        # pad K only if misaligned
        w1_bf16 = jnp.pad(w1_bf16, ((0, padded_k - in_dim), (0, 0)))
    return {
        "in_dim": in_dim,
        "w1": w1_bf16,                                      # (padded_k, 256) bf16
        "b1": b1.reshape(1, HIDDEN).astype(jnp.float32),    # (1, 256)
        "w2": w2.reshape(1, HIDDEN).astype(jnp.float32),    # (256, 1) -> (1, 256)
        "b2": b2.reshape(1).astype(jnp.float32),            # (1,) SMEM scalar
    }


# --------------------------------------------------------------------------- #
# Forward pass
# --------------------------------------------------------------------------- #
def discriminator_forward(x, params, *, force_tiled=False, max_tk=8192):
    batch, in_dim = x.shape
    assert in_dim == params["in_dim"], "x does not match the prepared params"
    w1, b1, w2, b2 = params["w1"], params["b1"], params["w2"], params["b2"]
    padded_k = w1.shape[0]
    itemsize = jnp.dtype(x.dtype).itemsize

    # ---- batch tile (up to 512 rows) ---------------------------------------
    tm = next((c for c in _TM_CANDIDATES if batch >= c), 8)

    # ---- full-K-resident path vs K-tiled fallback --------------------------
    tm_fk = tm
    while tm_fk > 8 and _fullk_vmem_bytes(tm_fk, padded_k, itemsize) > _TILE_VMEM_BUDGET:
        tm_fk //= 2
    use_fullk = (not force_tiled) and (
        _fullk_vmem_bytes(tm_fk, padded_k, itemsize) <= _TILE_VMEM_BUDGET)

    if use_fullk:
        tm = tm_fk
        # v7x has two TensorCores: give the 'parallel' batch axis >= 2 programs
        # whenever the batch allows.  w1 is VMEM-resident on this path, so the
        # smaller batch tile costs no extra HBM traffic.
        while tm > 8 and -(-batch // tm) == 1:
            tm //= 2
        tk = k_total = padded_k
    else:
        cands = [c for c in _TK_CANDIDATES if c <= max_tk] or [128]
        tk = next((c for c in cands
                   if _tiled_vmem_bytes(tm, c, itemsize) <= _TILE_VMEM_BUDGET), None)
        if tk is None:
            while tm > 8 and _tiled_vmem_bytes(tm, 128, itemsize) > _TILE_VMEM_BUDGET:
                tm //= 2
            tk = 128
        tk = min(tk, padded_k)
        k_total = _round_up(padded_k, tk)
        if k_total != padded_k:
            # Rare fallback-only pad (huge, misaligned in_dim); amortized cases
            # are handled in prepare_params.
            w1 = jnp.pad(w1, ((0, k_total - padded_k), (0, 0)))

    padded_b = _round_up(batch, tm)

    # ---- pad x only when its shape is actually misaligned (static check) ----
    pad_b, pad_k = padded_b - batch, k_total - in_dim
    if pad_b or pad_k:
        x = jnp.pad(x, ((0, pad_b), (0, pad_k)))

    if use_fullk:
        footprint = _fullk_vmem_bytes(tm, k_total, itemsize)
        grid_spec = pltpu.PrefetchScalarGridSpec(
            num_scalar_prefetch=0,
            grid=(padded_b // tm,),
            in_specs=[
                pl.BlockSpec((tm, k_total), lambda i: (i, 0)),       # x tile
                pl.BlockSpec((k_total, HIDDEN), lambda i: (0, 0)),   # w1 (resident)
                pl.BlockSpec((1, HIDDEN), lambda i: (0, 0)),         # b1 row
                pl.BlockSpec((1, HIDDEN), lambda i: (0, 0)),         # w2 row
                pl.BlockSpec(memory_space=pltpu.MemorySpace.SMEM),   # b2 scalar
            ],
            out_specs=pl.BlockSpec((tm, LANE), lambda i: (i, 0)),
        )
        kernel, dim_sem = _disc_kernel_fullk, ("parallel",)
    else:
        footprint = _tiled_vmem_bytes(tm, tk, itemsize)
        grid_spec = pltpu.PrefetchScalarGridSpec(
            num_scalar_prefetch=0,
            grid=(padded_b // tm, k_total // tk),
            in_specs=[
                pl.BlockSpec((tm, tk), lambda i, k: (i, k)),         # x tile
                pl.BlockSpec((tk, HIDDEN), lambda i, k: (k, 0)),     # w1 tile
                pl.BlockSpec((1, HIDDEN), lambda i, k: (0, 0)),      # b1 row
                pl.BlockSpec((1, HIDDEN), lambda i, k: (0, 0)),      # w2 row
                pl.BlockSpec(memory_space=pltpu.MemorySpace.SMEM),   # b2 scalar
            ],
            out_specs=pl.BlockSpec((tm, LANE), lambda i, k: (i, 0)),
            scratch_shapes=[pltpu.VMEM((tm, HIDDEN), jnp.float32)],
        )
        kernel, dim_sem = _disc_kernel_tiled, ("parallel", "arbitrary")

    vmem_limit = int(min(_VMEM_LIMIT_CAP,
                         max(32 * 1024 * 1024, footprint + 8 * 1024 * 1024)))

    out = pl.pallas_call(
        kernel,
        out_shape=jax.ShapeDtypeStruct((padded_b, LANE), jnp.float32),
        grid_spec=grid_spec,
        compiler_params=pltpu.CompilerParams(
            dimension_semantics=dim_sem,
            vmem_limit_bytes=vmem_limit,
        ),
    )(x, w1, b1, w2, b2)

    # Strip batch padding, take the valid lane.
    return out[:batch, :1]


# --------------------------------------------------------------------------- #
# Reference / test harness
# --------------------------------------------------------------------------- #
def init_params(key, input_dim, hidden=HIDDEN):
    """Roughly PyTorch's default U(-1/sqrt(fan_in), 1/sqrt(fan_in)) init."""
    k1, k2, k3, k4 = jax.random.split(key, 4)
    s1 = 1.0 / jnp.sqrt(jnp.float32(input_dim))
    s2 = 1.0 / jnp.sqrt(jnp.float32(hidden))
    w1 = jax.random.uniform(k1, (input_dim, hidden), jnp.float32, -s1, s1)
    b1 = jax.random.uniform(k2, (hidden,), jnp.float32, -s1, s1)
    w2 = jax.random.uniform(k3, (hidden, 1), jnp.float32, -s2, s2)
    b2 = jax.random.uniform(k4, (1,), jnp.float32, -s2, s2)
    return w1, b1, w2, b2


def reference_forward(x, w1, b1, w2, b2):
    h = x @ w1 + b1
    h = jnp.where(h > 0, h, 0.2 * h)
    z = h @ w2 + b2
    return 1.0 / (1.0 + jnp.exp(-z))


def _check(x, w1, b1, w2, b2, out):
    # Reference using the same bf16 quantization of x / w1 the kernel applies
    # (f32 everywhere else); residual differences are accumulation order and
    # the approximate reciprocal in the sigmoid.
    ref_bf16 = reference_forward(
        x.astype(jnp.bfloat16).astype(jnp.float32),
        w1.astype(jnp.bfloat16).astype(jnp.float32),
        b1, w2, b2)
    assert out.shape == ref_bf16.shape, (out.shape, ref_bf16.shape)
    assert jnp.allclose(out, ref_bf16, atol=2e-3, rtol=0.0), (out, ref_bf16)
    # Loose check vs the full-f32 reference (bf16 quantization noise).
    ref_f32 = reference_forward(x, w1, b1, w2, b2)
    assert jnp.allclose(out, ref_f32, atol=5e-2, rtol=0.0), (out, ref_f32)


if __name__ == "__main__":
    key = jax.random.PRNGKey(0)

    # 1) Shapes matching the module spec: max_length=8, vocab_size=16, batch=2.
    max_length, vocab_size, batch = 8, 16, 2
    input_dim = max_length * vocab_size               # 128
    kx, kp, key = jax.random.split(key, 3)
    x = jax.random.uniform(kx, (batch, input_dim), jnp.float32)
    w1, b1, w2, b2 = init_params(kp, input_dim)
    params = prepare_params(w1, b1, w2, b2)           # one-time weight layout
    out = jax.block_until_ready(discriminator_forward(x, params))
    _check(x, w1, b1, w2, b2, out)

    # 2) Misaligned in_dim + multiple batch tiles (exercises the conditional
    #    padding paths and the >=2-program 'parallel' batch axis used to keep
    #    v7x's second TensorCore busy).
    max_length, vocab_size, batch = 10, 13, 24
    input_dim = max_length * vocab_size               # 130
    kx, kp, key = jax.random.split(key, 3)
    x = jax.random.uniform(kx, (batch, input_dim), jnp.float32)
    w1, b1, w2, b2 = init_params(kp, input_dim)
    params = prepare_params(w1, b1, w2, b2)
    out = jax.block_until_ready(discriminator_forward(x, params))
    _check(x, w1, b1, w2, b2, out)

    # 3) Force the K-tiled fallback kernel (normally used only for very large
    #    in_dim) at a small shape so it stays covered.
    max_length, vocab_size, batch = 16, 32, 16
    input_dim = max_length * vocab_size               # 512
    kx, kp, key = jax.random.split(key, 3)
    x = jax.random.uniform(kx, (batch, input_dim), jnp.float32)
    w1, b1, w2, b2 = init_params(kp, input_dim)
    params = prepare_params(w1, b1, w2, b2)
    out = jax.block_until_ready(
        discriminator_forward(x, params, force_tiled=True, max_tk=128))
    _check(x, w1, b1, w2, b2, out)

    print("KERNEL_OK")
</pallas_src>

<mosaic_0001>
module attributes {stable_mosaic.version = 11 : i64} {
  func.func @_disc_kernel_fullk(%arg0: i32, %arg1: memref<8x128xf32, #tpu.memory_space<vmem>>, %arg2: memref<128x256xbf16, #tpu.memory_space<vmem>>, %arg3: memref<1x256xf32, #tpu.memory_space<vmem>>, %arg4: memref<1x256xf32, #tpu.memory_space<vmem>>, %arg5: memref<1xf32, #tpu.memory_space<smem>>, %arg6: memref<8x128xf32, #tpu.memory_space<vmem>>) attributes {dimension_semantics = [#tpu.dimension_semantics<parallel>], iteration_bounds = array<i64: 1>, scalar_prefetch = 0 : i64, scratch_operands = 0 : i64, tpu.core_type = #tpu.core_type<tc>, window_params = [{transform_indices = @transform_0, window_bounds = array<i64: 8, 128>}, {pipeline_mode = #tpu.pipeline_mode<synchronous>, transform_indices = @transform_1, window_bounds = array<i64: 128, 256>}, {pipeline_mode = #tpu.pipeline_mode<synchronous>, transform_indices = @transform_2, window_bounds = array<i64: 1, 256>}, {pipeline_mode = #tpu.pipeline_mode<synchronous>, transform_indices = @transform_3, window_bounds = array<i64: 1, 256>}, {transform_indices = @transform_4, window_bounds = array<i64: 1>}, {transform_indices = @transform_5, window_bounds = array<i64: 8, 128>}]} {
    %c0 = arith.constant 0 : index
    %c0_0 = arith.constant 0 : index
    %0 = vector.load %arg1[%c0, %c0_0] : memref<8x128xf32, #tpu.memory_space<vmem>>, vector<8x128xf32>
    %1 = arith.truncf %0 : vector<8x128xf32> to vector<8x128xbf16>
    %c0_1 = arith.constant 0 : index
    %c0_2 = arith.constant 0 : index
    %2 = vector.load %arg2[%c0_1, %c0_2] : memref<128x256xbf16, #tpu.memory_space<vmem>>, vector<128x256xbf16>
    %cst = arith.constant dense<0.000000e+00> : vector<8x256xf32>
    %3 = tpu.matmul %1, %2, %cst {dimension_numbers = #tpu.dot_dimension_numbers<[1], [0], [0], [1], [0, 0, 1, 1], [], []>} : vector<8x128xbf16>, vector<128x256xbf16>, vector<8x256xf32> -> vector<8x256xf32>
    %c0_3 = arith.constant 0 : index
    %c0_4 = arith.constant 0 : index
    %4 = vector.load %arg3[%c0_3, %c0_4] : memref<1x256xf32, #tpu.memory_space<vmem>>, vector<1x256xf32>
    %5 = vector.broadcast %4 : vector<1x256xf32> to vector<8x256xf32>
    %6 = arith.addf %3, %5 : vector<8x256xf32>
    %cst_5 = arith.constant 0.000000e+00 : f32
    %7 = vector.broadcast %cst_5 : f32 to vector<8x256xf32>
    %8 = arith.cmpf ogt, %6, %7 : vector<8x256xf32>
    %cst_6 = arith.constant 2.000000e-01 : f32
    %9 = vector.broadcast %cst_6 : f32 to vector<8x256xf32>
    %10 = arith.mulf %9, %6 : vector<8x256xf32>
    %11 = arith.select %8, %6, %10 : vector<8x256xi1>, vector<8x256xf32>
    %c0_7 = arith.constant 0 : index
    %c0_8 = arith.constant 0 : index
    %12 = vector.load %arg4[%c0_7, %c0_8] : memref<1x256xf32, #tpu.memory_space<vmem>>, vector<1x256xf32>
    %13 = vector.broadcast %12 : vector<1x256xf32> to vector<8x256xf32>
    %14 = arith.mulf %11, %13 : vector<8x256xf32>
    %cst_9 = arith.constant dense<0.000000e+00> : vector<8xf32>
    %15 = vector.multi_reduction <add>, %14, %cst_9 [1] : vector<8x256xf32> to vector<8xf32>
    %16 = vector.shape_cast %15 : vector<8xf32> to vector<8x1xf32>
    %c0_10 = arith.constant 0 : index
    %17 = memref.load %arg5[%c0_10] : memref<1xf32, #tpu.memory_space<smem>>
    %18 = vector.broadcast %17 : f32 to vector<8x1xf32>
    %19 = arith.addf %16, %18 : vector<8x1xf32>
    %cst_11 = arith.constant 0.000000e+00 : f32
    %20 = vector.broadcast %cst_11 : f32 to vector<8x1xf32>
    %21 = arith.subf %20, %19 : vector<8x1xf32>
    %22 = math.exp %21 : vector<8x1xf32>
    %cst_12 = arith.constant 1.000000e+00 : f32
    %23 = vector.broadcast %cst_12 : f32 to vector<8x1xf32>
    %24 = arith.addf %23, %22 : vector<8x1xf32>
    %25 = tpu.reciprocal %24 {approx = true} : vector<8x1xf32> -> vector<8x1xf32>
    %26 = vector.shape_cast %25 : vector<8x1xf32> to vector<8x1xf32>
    %27 = vector.broadcast %26 : vector<8x1xf32> to vector<8x128xf32>
    %c0_13 = arith.constant 0 : index
    %c0_14 = arith.constant 0 : index
    %28 = vector.load %arg6[%c0_13, %c0_14] : memref<8x128xf32, #tpu.memory_space<vmem>>, vector<8x128xf32>
    tpu.vector_store %arg6[%c0_13, %c0_14], %27 {strides = array<i32>} : memref<8x128xf32, #tpu.memory_space<vmem>>, vector<8x128xf32>,
    return
  }
  func.func @transform_0(%arg0: i32) -> (i32, i32) {
    %c0_i32 = arith.constant 0 : i32
    %c0_i32_0 = arith.constant 0 : i32
    return %arg0, %c0_i32 : i32, i32
  }
  func.func @transform_1(%arg0: i32) -> (i32, i32) {
    %c0_i32 = arith.constant 0 : i32
    %c0_i32_0 = arith.constant 0 : i32
    %c0_i32_1 = arith.constant 0 : i32
    return %c0_i32, %c0_i32_0 : i32, i32
  }
  func.func @transform_2(%arg0: i32) -> (i32, i32) {
    %c0_i32 = arith.constant 0 : i32
    %c0_i32_0 = arith.constant 0 : i32
    %c0_i32_1 = arith.constant 0 : i32
    return %c0_i32, %c0_i32_0 : i32, i32
  }
  func.func @transform_3(%arg0: i32) -> (i32, i32) {
    %c0_i32 = arith.constant 0 : i32
    %c0_i32_0 = arith.constant 0 : i32
    %c0_i32_1 = arith.constant 0 : i32
    return %c0_i32, %c0_i32_0 : i32, i32
  }
  func.func @transform_4(%arg0: i32) -> i32 {
    %c0_i32 = arith.constant 0 : i32
    %c0_i32_0 = arith.constant 0 : i32
    return %c0_i32 : i32
  }
  func.func @transform_5(%arg0: i32) -> (i32, i32) {
    %c0_i32 = arith.constant 0 : i32
    %c0_i32_0 = arith.constant 0 : i32
    return %arg0, %c0_i32 : i32, i32
  }
}

</mosaic_0001>

<bundles_post_ra>
// kernel: tpu_custom_call.1
= control target key start
LH: loop header
LB: loop body
LE: loop exit
PB: predicated region body
PF: predicated region fallthrough
CT: control target
= control target key end

     0   :  { %11 = vsyncpa [#allocation4], 0  ;;  %s458_s0 = inlined_call_operand.hbm [shape: f32[8,128], index: 0, kind: input, shape index: {}]   ;;  %s459_s1 = inlined_call_operand.hbm [shape: bf16[128,256], index: 1, kind: input, shape index: {}]   ;;  %s460_s2 = inlined_call_operand.vmem [shape: f32[1,256], index: 2, kind: input, shape index: {}]   ;;  %s461_s3 = inlined_call_operand.vmem [shape: f32[1,256], index: 3, kind: input, shape index: {}]   ;;  %s462_s4 = inlined_call_operand.<no memory space> [shape: f32[1], index: 4, kind: input, shape index: {}]   ;;  %s463_s5 = inlined_call_operand.hbm [shape: f32[8,128], index: 5, kind: output, shape index: {}]  }
   0x1   :  { %12 = vsyncpa [#allocation7], 0 }
   0x2   :  { %13 = vsyncpa [#allocation5], 0  ;;  %s370_s18 = smov [#allocation3]   ;;  %s371_s20 = smov [#allocation6]  }
   0x3   :  { %s20_s19 = sshll.u32 %s370_s18, 4  ;;  %s29_s21 = sshll.u32 %s371_s20, 4  ;;  %s21_s19 = int_to_ptr.vmem [resolvable:$true] %s20_s19  ;;  %s406_s21 = int_to_ptr.vmem [resolvable:$true] %s29_s21 }
   0x4   :  { %s298_s24 = scalar_lea.hbm %s458_s0, 128 }
   0x5   :  { %p299_p0 = scmp.ne.s32.totalorder %s458_s0, %s298_s24  ;;  %p302_p1 = scmp.lt.u32.totalorder %s298_s24, %s458_s0 }
   0x7   :  { %p304_p2 = pnand %p302_p1, %p299_p0 }
   0x9   :  { %307 = shalt.err (!%p304_p2)
}
   0xa   :  { %s308_s29 = scalar_lea.vmem %s21_s19, 128  ;;  %p313_p4 = scmp.lt.s32.totalorder %s21_s19, %s21_s19 }
   0xb   :  { %p309_p3 = scmp.ne.s32.totalorder %s21_s19, %s308_s29  ;;  %p314_p5 = scmp.lt.s32.totalorder %s308_s29, %s308_s29 }
   0xd   :  { %p315_p6 = por %p314_p5, %p313_p4 }
   0xf   :  { %p316_p7 = pnand %p315_p6, %p309_p3 }
  0x11   :  { %319 = shalt.err (!%p316_p7)
}
  0x12   :  { %23 = dma.hbm_to_vmem [thread:$0]  %s458_s0, 128, %s21_s19, [#allocation4]  }
  0x13   :  { %s320_s9 = scalar_lea.hbm %s459_s1, 2048 }
  0x14   :  { %p321_p8 = scmp.ne.s32.totalorder %s459_s1, %s320_s9  ;;  %p324_p9 = scmp.lt.u32.totalorder %s320_s9, %s459_s1 }
  0x16   :  { %p326_p10 = pnand %p324_p9, %p321_p8 }
  0x18   :  { %329 = shalt.err (!%p326_p10)
}
  0x19   :  { %s330_s14 = scalar_lea.vmem %s406_s21, 2048  ;;  %p335_p12 = scmp.lt.s32.totalorder %s406_s21, %s406_s21 }
  0x1a   :  { %p331_p11 = scmp.ne.s32.totalorder %s406_s21, %s330_s14  ;;  %p336_p13 = scmp.lt.s32.totalorder %s330_s14, %s330_s14 }
  0x1c   :  { %p337_p0 = por %p336_p13, %p335_p12 }
  0x1e   :  { %p338_p1 = pnand %p337_p0, %p331_p11 }
  0x20   :  { %341 = shalt.err (!%p338_p1)
}
  0x21   :  { %s372_s0 = smov 128   ;;  %s373_s15 = smov 8  }
  0x22   :  { %35 = dma.hbm_to_vmem [thread:$0]  %s459_s1, 2048, %s406_s21, [#allocation7], %s372_s0, %s372_s0, %s373_s15  }
  0x23   :  { %364 = dma.done.wait [#allocation4], 128  }
  0x24   :  { %365 = vsyncadd [#allocation4], 4294967168 }
  0x25   :  { %366 = dma.done.wait [#allocation7], 2048  }
  0x26   :  { %367 = vsyncadd [#allocation7], 4294965248  ;;  %v374_v0 = vmov 0   ;;  %v270_v1 = vld [vmem:[#allocation6 + $0x4] ss:$8 sps:$4 sm:$0xff]   ;;  %v49_v17 = vld [vmem:[#allocation3] sm:$0xff]  ;;  %v69_v19 = vlaneseq  ;;  %v224_v42 = vstv %s462_s4 }
  0x27   :  { %191 = vmatprep.mubr.bf16.mxu0 %v374_v0  ;;  %v272_v2 = vld [vmem:[#allocation6] ss:$8 sps:$4 sm:$0xff]   ;;  %159 = vmatprep.subr.bf16.mxu0 %v270_v1  ;;  %v273_v3 = vld [vmem:[#allocation6 + $0x14] ss:$8 sps:$4 sm:$0xff]   ;;  %v275_v4 = vld [vmem:[#allocation6 + $0x10] ss:$8 sps:$4 sm:$0xff]   ;;  %v50_v18 = vpack.c.bf16 %v49_v17, %v49_v17 }
  0x28   :  { %160 = vmatpush1.bf16.msra.mxu0 %v272_v2  ;;  %v276_v5 = vld [vmem:[#allocation6 + $0x24] ss:$8 sps:$4 sm:$0xff]   ;;  %v278_v6 = vld [vmem:[#allocation6 + $0x20] ss:$8 sps:$4 sm:$0xff]   ;;  %v279_v7 = vld [vmem:[#allocation6 + $0x34] ss:$8 sps:$4 sm:$0xff]  }
  0x29   :  { %161 = vmatprep.subr.bf16.mxu0 %v273_v3  ;;  %v281_v8 = vld [vmem:[#allocation6 + $0x30] ss:$8 sps:$4 sm:$0xff]   ;;  %v282_v9 = vld [vmem:[#allocation6 + $0x44] ss:$8 sps:$4 sm:$0xff]   ;;  %v284_v10 = vld [vmem:[#allocation6 + $0x40] ss:$8 sps:$4 sm:$0xff]  }
  0x2a   :  { %v285_v11 = vld [vmem:[#allocation6 + $0x54] ss:$8 sps:$4 sm:$0xff]   ;;  %v287_v12 = vld [vmem:[#allocation6 + $0x50] ss:$8 sps:$4 sm:$0xff]   ;;  %v288_v13 = vld [vmem:[#allocation6 + $0x64] ss:$8 sps:$4 sm:$0xff]  }
  0x2b   :  { %v290_v14 = vld [vmem:[#allocation6 + $0x60] ss:$8 sps:$4 sm:$0xff]   ;;  %v291_v15 = vld [vmem:[#allocation6 + $0x74] ss:$8 sps:$4 sm:$0xff]   ;;  %v293_v16 = vld [vmem:[#allocation6 + $0x70] ss:$8 sps:$4 sm:$0xff]  }
  0x2c   :  { %162 = vmatpush1.bf16.msra.mxu0 %v275_v4  ;;  %v70_v20 = vshrl.u32 %v69_v19, 7  ;;  %v67_v22 = vld [vmem:[%s460_s2] sm:$0x3]  ;;  %s375_s21 = smov [#allocation8]  }
  0x2d   :  { %163 = vmatprep.subr.bf16.mxu0 %v276_v5  ;;  %v206_v26 = vld [vmem:[%s461_s3] sm:$0x3]  ;;  %s238_s22 = sshll.u32 %s375_s21, 4  ;;  %s239_s22 = int_to_ptr.vmem [resolvable:$true] %s238_s22 }
  0x2e   :  { %v71_v21 = vsub.s32 0, %v70_v20  ;;  %v75_v23 = vsub.s32 1, %v70_v20  ;;  %s342_s23 = scalar_lea.vmem %s239_s22, 128  ;;  %p347_p3 = scmp.lt.s32.totalorder %s239_s22, %s239_s22 }
  0x2f   :  { %p343_p2 = scmp.ne.s32.totalorder %s239_s22, %s342_s23  ;;  %p348_p4 = scmp.lt.s32.totalorder %s342_s23, %s342_s23 }
  0x30   :  { %164 = vmatpush1.bf16.msra.mxu0 %v278_v6  ;;  %v72_v24 = vrot.slane %v67_v22, %v71_v21  ;;  %v76_v25 = vrot.slane %v67_v22, %v75_v23  ;;  %v211_v32 = vrot.slane %v206_v26, %v71_v21  ;;  %v215_v35 = vrot.slane %v206_v26, %v75_v23 }
  0x31   :  { %165 = vmatprep.subr.bf16.mxu0 %v279_v7  ;;  %p349_p5 = por %p348_p4, %p347_p3 }
  0x33   :  { %p350_p6 = pnand %p349_p5, %p343_p2 }
  0x34   :  { %166 = vmatpush1.bf16.msra.mxu0 %v281_v8 }
  0x35   :  { %167 = vmatprep.subr.bf16.mxu0 %v282_v9 }
  0x38   :  { %168 = vmatpush1.bf16.msra.mxu0 %v284_v10 }
  0x39   :  { %169 = vmatprep.subr.bf16.mxu0 %v285_v11 }
  0x3c   :  { %170 = vmatpush1.bf16.msra.mxu0 %v287_v12 }
  0x3d   :  { %171 = vmatprep.subr.bf16.mxu0 %v288_v13 }
  0x40   :  { %172 = vmatpush1.bf16.msra.mxu0 %v290_v14 }
  0x41   :  { %173 = vmatprep.subr.bf16.mxu0 %v291_v15 }
  0x44   :  { %174 = vmatpush1.bf16.msra.mxu0 %v293_v16 }
  0x47   :  { %192 = vmatmul.mubr.bf16.vlgmr.msra.gmra.mrb[0].mxu0 %v50_v18 }
 0x11a   :  { %v193_v27 = vpop.f32.mrb[0].mxu0 }
 0x11b   :  { %v194_v28 = vadd.f32 %v193_v27, %v72_v24  ;;  %v195_v29 = vpop.f32.mrb[1].mxu0 }
 0x11c   :  { %v196_v30 = vadd.f32 %v195_v29, %v76_v25  ;;  %v197_v31 = vpop.f32.mrb[2].mxu0 }
 0x11d   :  { %vm200_vm0 = vcmp.gt.f32.partialorder %v194_v28, 0.0  ;;  %v202_v33 = vmul.f32 0.2, %v194_v28  ;;  %v198_v34 = vpop.f32.mrb[3].mxu0 }
 0x11e   :  { %vm201_vm1 = vcmp.gt.f32.partialorder %v196_v30, 0.0  ;;  %v203_v36 = vmul.f32 0.2, %v196_v30 }
 0x11f   :  { %v204_v37 = vsel %vm200_vm0, %v194_v28, %v202_v33 }
 0x120   :  { %v205_v38 = vsel %vm201_vm1, %v196_v30, %v203_v36  ;;  %v218_v39 = vmul.f32 %v211_v32, %v204_v37 }
 0x121   :  { %v219_v40 = vmul.f32 %v215_v35, %v205_v38 }
 0x123   :  { %v220_v41 = vadd.f32 %v219_v40, %v218_v39 }
 0x125   :  { %221 = vadd.xlane.f32.xlu0 %v220_v41 }
 0x1b2   :  { %v222_v43 = vpop.xlane.xlu0 %221 }
 0x1b3   :  { %v225_v44 = vadd.f32 %v224_v42, %v222_v43 }
 0x1b5   :  { %v226_v45 = vsub.f32 0.0, %v225_v44 }
 0x1b7   :  { %v227_v46 = vmul.f32 1.442695, %v226_v45 }
 0x1b9   :  { %294 = vpow2.f32 %v227_v46 }
 0x1c3   :  { %v295_v47 = vpop.eup %294 }
 0x1c4   :  { %v229_v48 = vadd.f32 1.0, %v295_v47 }
 0x1c6   :  { %296 = vrcp.f32 %v229_v48 }
 0x1d0   :  { %v297_v49 = vpop.eup %296 }
 0x1d1   :  { %231 = vst [vmem:[#allocation8] sm:$0xff] %v297_v49 }
 0x1d2   :  { %353 = shalt.err (!%p350_p6)
}
 0x1d3   :  { %s354_s25 = scalar_lea.hbm %s463_s5, 128 }
 0x1d4   :  { %p355_p7 = scmp.ne.s32.totalorder %s463_s5, %s354_s25  ;;  %p358_p8 = scmp.lt.u32.totalorder %s354_s25, %s463_s5 }
 0x1d6   :  { %p360_p9 = pnand %p358_p8, %p355_p7 }
 0x1d8   :  { %363 = shalt.err (!%p360_p9)
}
 0x1d9   :  { %241 = dma.vmem_to_hbm [thread:$0]  %s239_s22, 128, %s463_s5, [#allocation5]  }
 0x1da   :  { %368 = dma.done.wait [#allocation5], 128  }
 0x1db   :  { %369 = vsyncadd [#allocation5], 4294967168 }
 0x1dc   :  { %245 = vsyncpa [#allocation4], 1 }
 0x1dd   :  { %246 = vsyncpa [#allocation7], 1 }
 0x1de   :  { %247 = vsyncpa [#allocation5], 1 }

</bundles_post_ra>
